<compile_context>
chip_gen: v7x
topology: tpu7x:2x2x1
jax: 0.10.0
libtpu: 0.0.40
codegen_flags: <defaults>
</compile_context>

<pallas_src>
import jax
import jax.numpy as jnp
from jax.experimental import pallas as pl
from jax.experimental.pallas import tpu as pltpu


def _inductive_mapping_kernel(w_ref, x_ref, o_ref):
    # w_ref: (F, H*C)  pre-softmaxed weights, VMEM-resident across the grid
    # x_ref: (1, F, TD) one batch slab, native layout (no wrapper transpose)
    # o_ref: (1, H*C, TD)
    out = jax.lax.dot_general(
        w_ref[...],
        x_ref[0],
        dimension_numbers=(((0,), (0,)), ((), ())),  # contract F on both; no .T
        preferred_element_type=jnp.float32,
    )  # (H*C, TD)
    o_ref[0] = out.astype(o_ref.dtype)


def _lane_tile(n: int, target: int = 2048) -> int:
    """Largest lane tile dividing n: a multiple of 128 capped at `target`,
    falling back to the full extent (full-extent blocks are always legal)."""
    if n <= target or n % 128 != 0:
        return n
    t = (target // 128) * 128
    while t >= 128:
        if n % t == 0:
            return t
        t -= 128
    return n


def inductive_mapping(x: jax.Array, w_fine_grain: jax.Array,
                      *, lane_tile_target: int = 2048) -> jax.Array:
    """x: (B, F, D), w_fine_grain: (H, F, C) -> (B, H, C, D)."""
    B, F, D = x.shape
    H, F2, C = w_fine_grain.shape
    assert F == F2, "fine_grain_particles mismatch"
    HC = H * C

    # Softmax over the fine-grain axis, computed ONCE per head (hoisted out of
    # the kernel), laid out as (F, H*C) so the kernel contracts dim 0 directly.
    # This is a tiny (H*F*C)-element op; the kernel never recomputes exp/sum.
    w_soft = jax.nn.softmax(w_fine_grain.astype(jnp.float32), axis=1)   # (H, F, C)
    w_mat = jnp.transpose(w_soft, (1, 0, 2)).reshape(F, HC).astype(x.dtype)

    TD = _lane_tile(D, lane_tile_target)
    grid = (B, D // TD)

    out = pl.pallas_call(
        _inductive_mapping_kernel,
        out_shape=jax.ShapeDtypeStruct((B, HC, D), x.dtype),
        grid_spec=pltpu.PrefetchScalarGridSpec(
            num_scalar_prefetch=0,
            grid=grid,
            in_specs=[
                # constant block index -> weight slab stays resident in VMEM
                pl.BlockSpec((F, HC), lambda b, j: (0, 0)),
                pl.BlockSpec((1, F, TD), lambda b, j: (b, 0, j)),
            ],
            out_specs=pl.BlockSpec((1, HC, TD), lambda b, j: (b, 0, j)),
        ),
        compiler_params=pltpu.CompilerParams(
            dimension_semantics=("parallel", "parallel")),
    )(w_mat, x)

    # (B, H*C, D) -> (B, H, C, D): contiguous split, no data movement.
    return out.reshape(B, H, C, D)


if __name__ == "__main__":
    # Deterministic parameter / input construction (synthetic; no checkpoint load).
    B, H = 2, 2
    fine_grain_particles = 16   # F
    coarse_grain_particles = 8  # C
    D = 32

    key = jax.random.PRNGKey(0)
    k_w, k_x = jax.random.split(key)
    # torch.randn-equivalent init for W_fine_grain: (heads, F, C)
    w_fine_grain = jax.random.normal(
        k_w, (H, fine_grain_particles, coarse_grain_particles), dtype=jnp.float32
    )
    x = jax.random.normal(k_x, (B, fine_grain_particles, D), dtype=jnp.float32)

    out = inductive_mapping(x, w_fine_grain)
    out = jax.block_until_ready(out)

    # Pure-JAX reference check of the same semantics.
    w_soft = jax.nn.softmax(w_fine_grain, axis=-2)
    ref = jnp.einsum("hfc,bfd->bhcd", w_soft, x)
    assert out.shape == (B, H, coarse_grain_particles, D)
    assert jnp.allclose(out, ref, atol=1e-5, rtol=1e-5)

    print("KERNEL_OK")
</pallas_src>

<mosaic_0001>
module attributes {stable_mosaic.version = 11 : i64} {
  func.func @_inductive_mapping_kernel(%arg0: i32, %arg1: i32, %arg2: memref<16x16xf32, #tpu.memory_space<vmem>>, %arg3: memref<1x16x32xf32, #tpu.memory_space<vmem>>, %arg4: memref<1x16x32xf32, #tpu.memory_space<vmem>>) attributes {dimension_semantics = [#tpu.dimension_semantics<parallel>, #tpu.dimension_semantics<parallel>], iteration_bounds = array<i64: 2, 1>, scalar_prefetch = 0 : i64, scratch_operands = 0 : i64, tpu.core_type = #tpu.core_type<tc>, window_params = [{pipeline_mode = #tpu.pipeline_mode<synchronous>, transform_indices = @transform_0, window_bounds = array<i64: 16, 16>}, {transform_indices = @transform_1, window_bounds = array<i64: 1, 16, 32>}, {transform_indices = @transform_2, window_bounds = array<i64: 1, 16, 32>}]} {
    %c0 = arith.constant 0 : index
    %c0_0 = arith.constant 0 : index
    %0 = vector.load %arg2[%c0, %c0_0] : memref<16x16xf32, #tpu.memory_space<vmem>>, vector<16x16xf32>
    %c0_1 = arith.constant 0 : index
    %c0_2 = arith.constant 0 : index
    %c0_3 = arith.constant 0 : index
    %1 = vector.load %arg3[%c0_1, %c0_2, %c0_3] : memref<1x16x32xf32, #tpu.memory_space<vmem>>, vector<1x16x32xf32>
    %2 = vector.shape_cast %1 : vector<1x16x32xf32> to vector<16x32xf32>
    %cst = arith.constant dense<0.000000e+00> : vector<16x32xf32>
    %3 = tpu.matmul %0, %2, %cst {dimension_numbers = #tpu.dot_dimension_numbers<[0], [0], [1], [1], [0, 1, 1, 1], [], []>} : vector<16x16xf32>, vector<16x32xf32>, vector<16x32xf32> -> vector<16x32xf32>
    %c0_4 = arith.constant 0 : index
    %c0_5 = arith.constant 0 : index
    %c0_6 = arith.constant 0 : index
    %4 = vector.load %arg4[%c0_4, %c0_5, %c0_6] : memref<1x16x32xf32, #tpu.memory_space<vmem>>, vector<1x16x32xf32>
    %5 = vector.shape_cast %4 : vector<1x16x32xf32> to vector<16x32xf32>
    %6 = vector.shape_cast %3 : vector<16x32xf32> to vector<1x16x32xf32>
    tpu.vector_store %arg4[%c0_4, %c0_5, %c0_6], %6 {strides = array<i32>} : memref<1x16x32xf32, #tpu.memory_space<vmem>>, vector<1x16x32xf32>,
    return
  }
  func.func @transform_0(%arg0: i32, %arg1: i32) -> (i32, i32) {
    %c0_i32 = arith.constant 0 : i32
    %c0_i32_0 = arith.constant 0 : i32
    %c0_i32_1 = arith.constant 0 : i32
    return %c0_i32, %c0_i32_0 : i32, i32
  }
  func.func @transform_1(%arg0: i32, %arg1: i32) -> (i32, i32, i32) {
    %c0_i32 = arith.constant 0 : i32
    %c0_i32_0 = arith.constant 0 : i32
    return %arg0, %c0_i32, %arg1 : i32, i32, i32
  }
  func.func @transform_2(%arg0: i32, %arg1: i32) -> (i32, i32, i32) {
    %c0_i32 = arith.constant 0 : i32
    %c0_i32_0 = arith.constant 0 : i32
    return %arg0, %c0_i32, %arg1 : i32, i32, i32
  }
}

</mosaic_0001>

<bundles_post_ra>
// kernel: tpu_custom_call.1
= control target key start
LH: loop header
LB: loop body
LE: loop exit
PB: predicated region body
PF: predicated region fallthrough
CT: control target
= control target key end

     0   :  { %7 = vsyncpa [#allocation3], 0  ;;  %s934_s0 = inlined_call_operand.hbm [shape: f32[16,16], index: 0, kind: input, shape index: {}]   ;;  %s935_s1 = inlined_call_operand.hbm [shape: f32[2,16,32], index: 1, kind: input, shape index: {}]   ;;  %s936_s2 = inlined_call_operand.hbm [shape: f32[2,16,32], index: 2, kind: output, shape index: {}]  }
   0x1   :  { %8 = vsyncpa [#allocation6], 0 }
   0x2   :  { %10 = vsyncpa [#allocation6 + $0x1], 0 }
   0x3   :  { %11 = vsyncpa [#allocation4], 0 }
   0x4   :  { %13 = vsyncpa [#allocation4 + $0x1], 0  ;;  %s709_s9 = smov 0   ;;  %s711_s10 = smov 0  }
   0x5   :  { %s713_s11 = smov 0   ;;  %s715_s12 = smov 0  }
   0x6   :  { %s717_s13 = smov 0   ;;  %s719_s14 = smov 0  }
   0x7 LB: > { %s427_s15 = sadd.s32 4294967295, %s685_s14   ;;  %s428_s16 = sadd.s32 4294967294, %s685_s14   ;;  %s685_s14 = sphi %s719_s14, %s19_s14   ;;  %s681_s13 = sphi %s717_s13, %s960_s13   ;;  %s677_s12 = sphi %s715_s12, %s959_s12   ;;  %s673_s11 = sphi %s713_s11, %s958_s11   ;;  %s669_s10 = sphi %s711_s10, %s957_s10   ;;  %s665_s9 = sphi %s709_s9, %s956_s9  }
   0x8   : > { %p74_p0 = scmp.ne.s32.totalorder %s669_s10, %s665_s9  ;;  %p743_p1 = scmp.eq.s32.totalorder %s427_s15, 0 }
   0x9   : > { %p747_p2 = scmp.eq.s32.totalorder %s427_s15, 1  ;;  %p106_p3 = scmp.eq.s32.totalorder %s428_s16, 1 }
   0xa   : > { %s941_s17 = scalar_select %p743_p1, 1, 0 }
   0xb   : > { %s942_s18 = scalar_select %p747_p2, 1, 0 }
   0xc   : > { %p753_p4 = por %p743_p1, %p74_p0  ;;  %p429_p5 = scmp.ge.s32.totalorder %s685_s14, 1 }
   0xd   : > { %p758_p6 = por %p106_p3, %p74_p0  ;;  %p113_p7 = scmp.lt.s32.totalorder %s685_s14, 3 }
   0xe   : > { %s943_s19 = scalar_select %p753_p4, 1, 0 }
   0xf   : > { %s944_s20 = scalar_select %p758_p6, 1, 0 }
  0x10   : > { %p763_p8 = pnand %p429_p5, %p113_p7  ;;  %s687_s22 = smov [#allocation2]  }
  0x11   : > { %s125_s23 = sshll.u32 %s687_s22, 4  ;;  %s31_s25 = sadd.s32 1, %s681_s13  ;;  %s126_s23 = int_to_ptr.vmem [resolvable:$true] %s125_s23 }
  0x12   : > { %s945_s21 = scalar_select %p763_p8, 1, 0 }
  0x13   : > { %p471_p9 = pneg %p763_p8  ;;  %s541_s28 = scalar_lea.hbm %s934_s0, 256 }
  0x14   : > { %p542_p12 = scmp.ne.s32.totalorder %s934_s0, %s541_s28  ;;  %p548_p5 = scmp.lt.u32.totalorder %s541_s28, %s934_s0 }
  0x15   : > { %p772_p11 = pnand %p471_p9, %p743_p1 }
  0x17   : > { %p543_p13 = pneg %p772_p11 }
  0x19   : > { %p544_p0 = pnand %p543_p13, %p542_p12 }
  0x1b   : > { %p545_p3 = pneg %p544_p0 }
  0x1d   : > { %p550_p7 = pnand %p548_p5, %p545_p3 }
  0x1f   : > { %553 = shalt.err (!%p550_p7)
}
  0x20   : > { %s554_s5 = scalar_lea.vmem %s126_s23, 256  ;;  %p562_p4 = scmp.lt.s32.totalorder %s126_s23, %s126_s23 }
  0x21   : > { %p555_p9 = scmp.ne.s32.totalorder %s126_s23, %s554_s5  ;;  %p563_p1 = scmp.lt.s32.totalorder %s554_s5, %s554_s5 }
  0x23   : > { %p557_p10 = pnand %p555_p9, %p543_p13  ;;  %p564_p8 = por %p563_p1, %p562_p4 }
  0x25   : > { %p558_p6 = pneg %p557_p10 }
  0x27   : > { %p565_p2 = pnand %p564_p8, %p558_p6 }
  0x29   : > { %568 = shalt.err (!%p565_p2)
}
  0x2a   : > { %s688_s6 = smov 128   ;;  %s689_s7 = smov 8  }
  0x2b   : > { %474 = dma.hbm_to_vmem [thread:$0]  (!%p772_p11), %s934_s0, 256, %s126_s23, [#allocation3], %s688_s6, %s688_s6, %s689_s7  }
  0x2c   : > { %p33_p1 = scmp.ge.s32.totalorder %s31_s25, 2  ;;  %s61_s16 = sadd.s32 1, %s673_s11 }
  0x2d   : > { %p68_p2 = scmp.ne.s32.totalorder %s673_s11, %s669_s10  ;;  %p69_p4 = scmp.eq.s32.totalorder %s685_s14, 0 }
  0x2e   : > { %s962_s25 = smov (%p33_p1, %s31_s25), 0  ;;  %p948_p8 = scmp.ne.s32.totalorder %s942_s18, 0 }
  0x2f   : > { %p802_p6 = por %p69_p4, %p68_p2  ;;  %s56_s26 = ssub.s32 %s681_s13, %s962_s25 }
  0x30   : > { %p808_p10 = por %p948_p8, %p68_p2  ;;  %p484_p12 = scmp.lt.s32.totalorder %s685_s14, 2 }
  0x31   : > { %p59_p11 = scmp.eq.s32.totalorder %s56_s26, 0  ;;  %s139_s23 = sand.u32 1, %s673_s11  }
  0x32   : > { %s432_s27 = sshll.u32 %s139_s23, 4  ;;  %s446_s29 = sshll.u32 %s681_s13, 8 }
  0x33   : > { %s817_s28 = scalar_select %p59_p11, %s673_s11, %s61_s16  }
  0x34   : > { %s823_s4 = scalar_lea.hbm %s935_s1, %s446_s29  ;;  %s143_s18 = scalar_lea.vmem [#allocation5], %s432_s27 }
  0x35   : > { %s151_s5 = sshll.u32 %s143_s18, 4  ;;  %p829_p13 = pnand %p484_p12, %p802_p6  ;;  %s825_s5 = int_to_ptr.vmem [resolvable:$true] %s151_s5 }
  0x36   : > { %s833_s15 = scalar_lea.sflag [#allocation6], %s139_s23  ;;  %s569_s16 = scalar_lea.hbm %s823_s4, 256 }
  0x37   : > { %p570_p0 = scmp.ne.s32.totalorder %s823_s4, %s569_s16  ;;  %p571_p3 = pneg %p829_p13 }
  0x38   : > { %s574_s22 = scalar_lea.hbm %s935_s1, 512  ;;  %p575_p9 = scmp.lt.u32.totalorder %s823_s4, %s935_s1 }
  0x39   : > { %p572_p5 = pnand %p571_p3, %p570_p0  ;;  %p576_p1 = scmp.lt.u32.totalorder %s574_s22, %s569_s16 }
  0x3a   : > { %p578_p4 = scmp.lt.u32.totalorder %s569_s16, %s823_s4 }
  0x3b   : > { %p573_p7 = pneg %p572_p5  ;;  %p577_p2 = por %p576_p1, %p575_p9 }
  0x3d   : > { %p579_p6 = por %p578_p4, %p577_p2 }
  0x3f   : > { %p580_p8 = pnand %p579_p6, %p573_p7 }
  0x41   : > { %583 = shalt.err (!%p580_p8)
}
  0x42   : > { %s584_s23 = scalar_lea.vmem %s825_s5, 256  ;;  %s690_s3 = smov [#allocation5]  }
  0x43   : > { %p585_p12 = scmp.ne.s32.totalorder %s825_s5, %s584_s23  ;;  %s589_s18 = sshll.u32 %s690_s3, 4  ;;  %s590_s18 = int_to_ptr.vmem [resolvable:$false] %s589_s18 }
  0x44   : > { %s591_s26 = scalar_lea.vmem %s590_s18, 512  ;;  %p592_p5 = scmp.lt.s32.totalorder %s825_s5, %s590_s18 }
  0x45   : > { %p587_p11 = pnand %p585_p12, %p571_p3  ;;  %p593_p9 = scmp.lt.s32.totalorder %s591_s26, %s584_s23 }
  0x47   : > { %p588_p0 = pneg %p587_p11  ;;  %p594_p1 = por %p593_p9, %p592_p5 }
  0x49   : > { %p595_p2 = pnand %p594_p1, %p588_p0 }
  0x4b   : > { %598 = shalt.err (!%p595_p2)
}
  0x4c   : > { %478 = dma.hbm_to_vmem [thread:$0]  (!%p829_p13), %s823_s4, 256, %s825_s5, %s833_s15, %s688_s6, %s688_s6, %s689_s7  }
  0x4d   : > { %p951_p3 = scmp.ne.s32.totalorder %s945_s21, 0 }
  0x4e   : > { %p952_p7 = scmp.ne.s32.totalorder (!%p951_p3), %s941_s17, 0 }
  0x4f   : > { %163 = sbr.rel (%p951_p3) target bundleno = 453 (0x1c5), region = 28 }
  0x56   : > { %652 = dma.done.wait (%p952_p7), [#allocation3], 256  }
  0x57   : > { %654 = vsyncadd (%p952_p7), [#allocation3], 4294967040  ;;  %s871_s16 = sand.u32 1, %s669_s10   ;;  %p953_p4 = scmp.ne.s32.totalorder %s943_s19, 0 }
  0x58   : > { %s437_s8 = sshll.u32 %s871_s16, 4  ;;  %s170_s27 = scalar_lea.sflag [#allocation6], %s871_s16 }
  0x59   : > { %s173_s22 = scalar_lea.vmem [#allocation5], %s437_s8 }
  0x5a   : > { %656 = dma.done.wait (%p953_p4), %s170_s27, 256  }
  0x5b   : > { %658 = vsyncadd (%p953_p4), %s170_s27, 4294967040  ;;  %v194_v0 = vld [vmem:[#allocation2] sm:$0xff]  ;;  %v197_v2 = vld [vmem:[%s173_s22 + $0x8] sm:$0xff]  ;;  %vm230_vm0 = vcmask 130048   ;;  %s193_s17 = scalar_lea.vmem [#allocation7], %s437_s8  ;;  %s447_s21 = sshll.u32 %s677_s12, 8 }
  0x5c   : > { %v196_v1 = vld [vmem:[%s173_s22] sm:$0xff]  ;;  %198 = vxpose.xlu0.b32.start [1/2] (short) (narrow) %v194_v0, 16  ;;  %v195_v3 = vld [vmem:[#allocation2 + $0x8] sm:$0xff]  ;;  %s330_s19 = sshll.u32 %s193_s17, 4  ;;  %vm312_vm1 = vcmask 261120   ;;  %s885_s4 = scalar_lea.hbm %s936_s2, %s447_s21  ;;  %s880_s19 = int_to_ptr.vmem [resolvable:$true] %s330_s19 }
  0x5d   : > { %v459_v4 = vpack.c.bf16 %v197_v2, %v196_v1  ;;  %s316_s5 = scalar_lea.sflag [#allocation4], %s871_s16  ;;  %s599_s15 = scalar_lea.vmem %s880_s19, 256 }
  0x5e   : > { %p600_p13 = scmp.ne.s32.totalorder %s880_s19, %s599_s15  ;;  %s691_s12 = smov [#allocation7]  }
  0x5f   : > { %460 = vmatprep.subr.bf16.mxu0 %v459_v4  ;;  %s603_s29 = sshll.u32 %s691_s12, 4  ;;  %s604_s29 = int_to_ptr.vmem [resolvable:$false] %s603_s29 }
  0x60   : > { %199 = vxpose.xlu0.b32.end [2/2] (short) (narrow) %v195_v3, 16  ;;  %462 = vmatpush3.bf16.msra.mxu0 %v459_v4  ;;  %p601_p6 = pnand %p600_p13, %p808_p10  ;;  %s605_s30 = scalar_lea.vmem %s604_s29, 512 }
  0x61   : > { %p606_p12 = scmp.lt.s32.totalorder %s880_s19, %s604_s29  ;;  %p607_p11 = scmp.lt.s32.totalorder %s605_s30, %s599_s15 }
  0x62   : > { %p602_p8 = pneg %p601_p6 }
  0x63   : > { %p608_p0 = por %p607_p11, %p606_p12 }
  0x65   : > { %p609_p5 = pnand %p608_p0, %p602_p8 }
  0xdc   : > { %v214_v5 = vpop.trf.xlu0 }
  0xdd   : > { %456 = vmatprep.mubr.msk.f32.mxu0 %vm230_vm0, %v214_v5 }
  0xe0   : > { %v215_v6 = vpop.trf.xlu0 }
  0xe1   : > { %457 = vmatmul.mubr.msk.f32.vlgmr.msra.gmra.mrb[0].mxu0 %vm230_vm0, %v215_v6 }
 0x1b4   : > { %v458_v7 = vpop.f32.mrb[0].mxu0 }
 0x1b5   : > { %314 = vst.msk [vmem:[%s193_s17 + $0x8] sm:$0xff] %vm312_vm1, %v458_v7  ;;  %v303_v8 = vpop.f32.mrb[1].mxu0 }
 0x1b6   : > { %313 = vst.msk [vmem:[%s193_s17] sm:$0xff] %vm312_vm1, %v303_v8 }
 0x1b7   : > { %612 = shalt.err (!%p609_p5)
}
 0x1b8   : > { %s613_s23 = scalar_lea.hbm %s885_s4, 256  ;;  %s617_s26 = scalar_lea.hbm %s936_s2, 512 }
 0x1b9   : > { %p614_p9 = scmp.ne.s32.totalorder %s885_s4, %s613_s23  ;;  %p618_p3 = scmp.lt.u32.totalorder %s885_s4, %s936_s2 }
 0x1ba   : > { %p619_p7 = scmp.lt.u32.totalorder %s617_s26, %s613_s23  ;;  %p621_p13 = scmp.lt.u32.totalorder %s613_s23, %s885_s4 }
 0x1bb   : > { %p615_p1 = pnand %p614_p9, %p808_p10 }
 0x1bc   : > { %p620_p4 = por %p619_p7, %p618_p3 }
 0x1bd   : > { %p616_p2 = pneg %p615_p1 }
 0x1be   : > { %p622_p6 = por %p621_p13, %p620_p4 }
 0x1c0   : > { %p623_p8 = pnand %p622_p6, %p616_p2 }
 0x1c2   : > { %626 = shalt.err (!%p623_p8)
}
 0x1c3   : > { %s692_s22 = smov 128   ;;  %s693_s17 = smov 8  }
 0x1c4   : > { %469 = dma.vmem_to_hbm [thread:$0]  (%p808_p10), %s880_s19, 256, %s885_s4, %s316_s5, %s692_s22, %s692_s22, %s693_s17  }
 0x1c5 PF: > { %s345_s21 = sand.u32 1, %s665_s9   ;;  %p954_p12 = scmp.ne.s32.totalorder %s944_s20, 0 }
 0x1c6   : > { %p955_p11 = scmp.ge.s32.totalorder %s685_s14, 2  ;;  %s346_s6 = scalar_lea.sflag [#allocation4], %s345_s21 }
 0x1c8   : > { %p480_p0 = pnand %p955_p11, %p954_p12 }
 0x1ca   : > { %660 = dma.done.wait (!%p480_p0), %s346_s6, 256  }
 0x1cb   : > { %662 = vsyncadd (!%p480_p0), %s346_s6, 4294967040  ;;  %s19_s14 = sadd.s32 1, %s685_s14   ;;  %s956_s9 = smov %s669_s10 }
 0x1cc   : > { %p16_p5 = scmp.ge.s32.totalorder %s19_s14, 4   ;;  %s957_s10 = smov %s673_s11 }
 0x1cd   : > { %s958_s11 = smov %s817_s28  ;;  %s959_s12 = smov %s681_s13 }
 0x1ce   : > { %s960_s13 = smov %s962_s25  ;;  %18 = sbr.rel (!%p16_p5) target bundleno = 7 (0x7), region = 78 }
 0x1d5   :  { %351 = vsyncpa [#allocation3], 1 }
 0x1d6   :  { %353 = vsyncpa [#allocation3 + $0x1], 1 }
 0x1d7   :  { %354 = vsyncpa [#allocation6], 1 }
 0x1d8   :  { %356 = vsyncpa [#allocation6 + $0x1], 1 }
 0x1d9   :  { %357 = vsyncpa [#allocation4], 1 }
 0x1da   :  { %359 = vsyncpa [#allocation4 + $0x1], 1 }

</bundles_post_ra>
